<compile_context>
chip_gen: v7x
topology: tpu7x:2x2x1
jax: 0.10.0
libtpu: 0.0.40
codegen_flags: <defaults>
</compile_context>

<pallas_src>
import functools

import jax
import jax.numpy as jnp
import numpy as np
from jax.experimental import pallas as pl
from jax.experimental.pallas import tpu as pltpu  # noqa: F401  (TPU backend)


def _round_up(n, m):
    return (n + m - 1) // m * m


def _fused_sage_kernel(a0_ref, a1_ref, x_ref, w1_ref, w2_ref, b_ref, o_ref,
                       *, d0p: int, d1p: int):
    """Two fused SAGEConv(mean) layers.

    layer l:  h = concat([h_dst, A_l @ h_src], -1) @ [W_self; W_neigh] + b_l
    with ReLU between layers.  Matmuls run bf16 x bf16 -> f32 on the MXU;
    bias add / ReLU are done in f32 on the VPU.
    """
    x = x_ref[...]                                                  # (S0P, FP) bf16

    # ---- layer 1 ----
    agg0 = jnp.dot(a0_ref[...], x, preferred_element_type=jnp.float32)      # (D0P, FP) f32
    z1 = jnp.concatenate([x[:d0p, :], agg0.astype(jnp.bfloat16)], axis=-1)  # (D0P, 2*FP)
    h1 = jnp.dot(z1, w1_ref[...], preferred_element_type=jnp.float32)       # (D0P, HP)
    h1 = jnp.maximum(h1 + b_ref[0:1, :], 0.0)                               # f32

    # ---- layer 2 ----
    h1b = h1.astype(jnp.bfloat16)
    agg1 = jnp.dot(a1_ref[...], h1b, preferred_element_type=jnp.float32)    # (D1P, HP)
    z2 = jnp.concatenate([h1[:d1p, :].astype(jnp.bfloat16),
                          agg1.astype(jnp.bfloat16)], axis=-1)              # (D1P, 2*HP)
    out = jnp.dot(z2, w2_ref[...], preferred_element_type=jnp.float32)
    out = out + b_ref[1:2, :]
    o_ref[...] = out.astype(o_ref.dtype)


def model_forward(params, A0, A1, x, num_dst0, num_dst1):
    """Two-layer GraphSAGE forward (mirrors PyTorch Model.forward)."""
    num_src0, in_feats = x.shape
    h_feats = params["wn1"].shape[1]

    LANE, SUB = 128, 8
    FP = _round_up(in_feats, LANE)
    HP = _round_up(h_feats, LANE)
    S0P = _round_up(num_src0, SUB)
    D0P = _round_up(num_dst0, SUB)     # <= S0P (num_dst0 <= num_src0 in an MFG)
    D1P = _round_up(num_dst1, SUB)     # <= D0P

    def pad2(a, r, c):
        return jnp.pad(a, ((0, r - a.shape[0]), (0, c - a.shape[1])))

    # Zero padding keeps semantics exact: padded A rows/cols contribute 0,
    # padded weight rows/cols and bias lanes produce 0 output columns.
    xp = pad2(x, S0P, FP).astype(jnp.bfloat16)
    a0p = pad2(A0, D0P, S0P).astype(jnp.bfloat16)
    a1p = pad2(A1, D1P, D0P).astype(jnp.bfloat16)

    # Stacked projections: z @ [W_self; W_neigh] with z = [h_dst, A @ h_src].
    w1 = jnp.concatenate([pad2(params["ws1"], FP, HP),
                          pad2(params["wn1"], FP, HP)], axis=0).astype(jnp.bfloat16)
    w2 = jnp.concatenate([pad2(params["ws2"], HP, HP),
                          pad2(params["wn2"], HP, HP)], axis=0).astype(jnp.bfloat16)
    b = jnp.stack([jnp.pad(params["b1"], (0, HP - h_feats)),
                   jnp.pad(params["b2"], (0, HP - h_feats))]).astype(jnp.float32)

    kernel = functools.partial(_fused_sage_kernel, d0p=D0P, d1p=D1P)
    full = lambda a: pl.BlockSpec(a.shape, lambda: (0,) * a.ndim)

    # TODO(synk): for realistic MFG sizes, replace the single full-array blocks
    # with a (dst_rows, src) grid + f32 VMEM accumulator (pl.when init/finalize,
    # dimension_semantics=("parallel","arbitrary")); everything here fits VMEM.
    out = pl.pallas_call(
        kernel,
        out_shape=jax.ShapeDtypeStruct((D1P, HP), jnp.float32),
        in_specs=[full(a0p), full(a1p), full(xp), full(w1), full(w2), full(b)],
        out_specs=pl.BlockSpec((D1P, HP), lambda: (0, 0)),
    )(a0p, a1p, xp, w1, w2, b)

    return out[:num_dst1, :h_feats]


def _reference_forward(params, A0, A1, x, num_dst0, num_dst1):
    h = jnp.maximum(
        x[:num_dst0] @ params["ws1"] + (A0 @ x) @ params["wn1"] + params["b1"], 0.0)
    return h[:num_dst1] @ params["ws2"] + (A1 @ h) @ params["wn2"] + params["b2"]


def _mean_adj(key, num_dst, num_src, p=0.4):
    """Deterministic random graph block -> row-normalized dense adjacency."""
    edges = (jax.random.uniform(key, (num_dst, num_src)) < p).astype(jnp.float32)
    deg = jnp.maximum(edges.sum(axis=1, keepdims=True), 1.0)
    return edges / deg


if __name__ == "__main__":
    # small shapes consistent with the module
    in_feats, h_feats = 32, 32
    num_src0, num_dst0, num_dst1 = 16, 12, 8

    key = jax.random.PRNGKey(0)
    k_x, k_a0, k_a1, k1, k2, k3, k4, k5, k6 = jax.random.split(key, 9)

    x = jax.random.normal(k_x, (num_src0, in_feats), dtype=jnp.float32)
    A0 = _mean_adj(k_a0, num_dst0, num_src0)   # MFG block 0: (dst0, src0)
    A1 = _mean_adj(k_a1, num_dst1, num_dst0)   # MFG block 1: (dst1, dst0)

    params = {
        "wn1": 0.1 * jax.random.normal(k1, (in_feats, h_feats), jnp.float32),
        "ws1": 0.1 * jax.random.normal(k2, (in_feats, h_feats), jnp.float32),
        "b1":  0.1 * jax.random.normal(k3, (h_feats,), jnp.float32),
        "wn2": 0.1 * jax.random.normal(k4, (h_feats, h_feats), jnp.float32),
        "ws2": 0.1 * jax.random.normal(k5, (h_feats, h_feats), jnp.float32),
        "b2":  0.1 * jax.random.normal(k6, (h_feats,), jnp.float32),
    }

    out = model_forward(params, A0, A1, x, num_dst0, num_dst1)
    out = jax.block_until_ready(out)

    ref = _reference_forward(params, A0, A1, x, num_dst0, num_dst1)
    # bf16 MXU operands (f32 accumulation) -> ~1e-2-level differences vs f32 ref.
    np.testing.assert_allclose(np.asarray(out), np.asarray(ref), rtol=2e-2, atol=2e-2)

    print("KERNEL_OK")
</pallas_src>

<mosaic_0001>
module attributes {stable_mosaic.version = 11 : i64} {
  func.func @_fused_sage_kernel(%arg0: memref<16x16xbf16, #tpu.memory_space<vmem>>, %arg1: memref<8x16xbf16, #tpu.memory_space<vmem>>, %arg2: memref<16x128xbf16, #tpu.memory_space<vmem>>, %arg3: memref<256x128xbf16, #tpu.memory_space<vmem>>, %arg4: memref<256x128xbf16, #tpu.memory_space<vmem>>, %arg5: memref<2x128xf32, #tpu.memory_space<vmem>>, %arg6: memref<8x128xf32, #tpu.memory_space<vmem>>) attributes {dimension_semantics = [], scalar_prefetch = 0 : i64, scratch_operands = 0 : i64, tpu.core_type = #tpu.core_type<tc>} {
    %c0 = arith.constant 0 : index
    %c0_0 = arith.constant 0 : index
    %0 = vector.load %arg2[%c0, %c0_0] : memref<16x128xbf16, #tpu.memory_space<vmem>>, vector<16x128xbf16>
    %c0_1 = arith.constant 0 : index
    %c0_2 = arith.constant 0 : index
    %1 = vector.load %arg0[%c0_1, %c0_2] : memref<16x16xbf16, #tpu.memory_space<vmem>>, vector<16x16xbf16>
    %cst = arith.constant dense<0.000000e+00> : vector<16x128xf32>
    %2 = tpu.matmul %1, %0, %cst {dimension_numbers = #tpu.dot_dimension_numbers<[1], [0], [0], [1], [0, 0, 1, 1], [], []>} : vector<16x16xbf16>, vector<16x128xbf16>, vector<16x128xf32> -> vector<16x128xf32>
    %3 = arith.truncf %2 : vector<16x128xf32> to vector<16x128xbf16>
    %4 = tpu.concatenate %0, %3 in 1 : vector<16x128xbf16>, vector<16x128xbf16> -> vector<16x256xbf16>
    %c0_3 = arith.constant 0 : index
    %c0_4 = arith.constant 0 : index
    %5 = vector.load %arg3[%c0_3, %c0_4] : memref<256x128xbf16, #tpu.memory_space<vmem>>, vector<256x128xbf16>
    %cst_5 = arith.constant dense<0.000000e+00> : vector<16x128xf32>
    %6 = tpu.matmul %4, %5, %cst_5 {dimension_numbers = #tpu.dot_dimension_numbers<[1], [0], [0], [1], [0, 0, 1, 1], [], []>} : vector<16x256xbf16>, vector<256x128xbf16>, vector<16x128xf32> -> vector<16x128xf32>
    %c0_6 = arith.constant 0 : index
    %c0_7 = arith.constant 0 : index
    %7 = vector.load %arg5[%c0_6, %c0_7] : memref<2x128xf32, #tpu.memory_space<vmem>>, vector<1x128xf32>
    %8 = vector.broadcast %7 : vector<1x128xf32> to vector<16x128xf32>
    %9 = arith.addf %6, %8 : vector<16x128xf32>
    %cst_8 = arith.constant 0.000000e+00 : f32
    %10 = vector.broadcast %cst_8 : f32 to vector<16x128xf32>
    %11 = arith.maximumf %9, %10 : vector<16x128xf32>
    %12 = arith.truncf %11 : vector<16x128xf32> to vector<16x128xbf16>
    %c0_9 = arith.constant 0 : index
    %c0_10 = arith.constant 0 : index
    %13 = vector.load %arg1[%c0_9, %c0_10] : memref<8x16xbf16, #tpu.memory_space<vmem>>, vector<8x16xbf16>
    %cst_11 = arith.constant dense<0.000000e+00> : vector<8x128xf32>
    %14 = tpu.matmul %13, %12, %cst_11 {dimension_numbers = #tpu.dot_dimension_numbers<[1], [0], [0], [1], [0, 0, 1, 1], [], []>} : vector<8x16xbf16>, vector<16x128xbf16>, vector<8x128xf32> -> vector<8x128xf32>
    %15 = vector.extract_strided_slice %11 {offsets = [0, 0], sizes = [8, 128], strides = [1, 1]} : vector<16x128xf32> to vector<8x128xf32>
    %16 = arith.truncf %15 : vector<8x128xf32> to vector<8x128xbf16>
    %17 = arith.truncf %14 : vector<8x128xf32> to vector<8x128xbf16>
    %18 = tpu.concatenate %16, %17 in 1 : vector<8x128xbf16>, vector<8x128xbf16> -> vector<8x256xbf16>
    %c0_12 = arith.constant 0 : index
    %c0_13 = arith.constant 0 : index
    %19 = vector.load %arg4[%c0_12, %c0_13] : memref<256x128xbf16, #tpu.memory_space<vmem>>, vector<256x128xbf16>
    %cst_14 = arith.constant dense<0.000000e+00> : vector<8x128xf32>
    %20 = tpu.matmul %18, %19, %cst_14 {dimension_numbers = #tpu.dot_dimension_numbers<[1], [0], [0], [1], [0, 0, 1, 1], [], []>} : vector<8x256xbf16>, vector<256x128xbf16>, vector<8x128xf32> -> vector<8x128xf32>
    %c1 = arith.constant 1 : index
    %c0_15 = arith.constant 0 : index
    %21 = vector.load %arg5[%c1, %c0_15] : memref<2x128xf32, #tpu.memory_space<vmem>>, vector<1x128xf32>
    %22 = vector.broadcast %21 : vector<1x128xf32> to vector<8x128xf32>
    %23 = arith.addf %20, %22 : vector<8x128xf32>
    %c0_16 = arith.constant 0 : index
    %c0_17 = arith.constant 0 : index
    %24 = vector.load %arg6[%c0_16, %c0_17] : memref<8x128xf32, #tpu.memory_space<vmem>>, vector<8x128xf32>
    tpu.vector_store %arg6[%c0_16, %c0_17], %23 {strides = array<i32>} : memref<8x128xf32, #tpu.memory_space<vmem>>, vector<8x128xf32>,
    return
  }
}

</mosaic_0001>

<bundles_post_ra>
// kernel: tpu_custom_call.1
= control target key start
LH: loop header
LB: loop body
LE: loop exit
PB: predicated region body
PF: predicated region fallthrough
CT: control target
= control target key end

     0   :  { %11 = vsyncpa [#allocation3], 0  ;;  %s985_s0 = inlined_call_operand.hbm [shape: bf16[16,16], index: 0, kind: input, shape index: {}]   ;;  %s986_s1 = inlined_call_operand.hbm [shape: bf16[8,16], index: 1, kind: input, shape index: {}]   ;;  %s987_s2 = inlined_call_operand.hbm [shape: bf16[16,128], index: 2, kind: input, shape index: {}]   ;;  %s988_s3 = inlined_call_operand.hbm [shape: bf16[256,128], index: 3, kind: input, shape index: {}]   ;;  %s989_s4 = inlined_call_operand.hbm [shape: bf16[256,128], index: 4, kind: input, shape index: {}]   ;;  %s990_s5 = inlined_call_operand.vmem [shape: f32[2,128], index: 5, kind: input, shape index: {}]   ;;  %s991_s6 = inlined_call_operand.hbm [shape: f32[8,128], index: 6, kind: output, shape index: {}]  }
   0x1   :  { %12 = vsyncpa [#allocation6], 0 }
   0x2   :  { %13 = vsyncpa [#allocation9], 0 }
   0x3   :  { %14 = vsyncpa [#allocation4], 0  ;;  %s848_s21 = smov [#allocation5]   ;;  %s708_s25 = scalar_lea.hbm %s986_s1, 64 }
   0x4   :  { %s33_s22 = sshll.u32 %s848_s21, 4  ;;  %p709_p0 = scmp.ne.s32.totalorder %s986_s1, %s708_s25  ;;  %s34_s22 = int_to_ptr.vmem [resolvable:$true] %s33_s22 }
   0x5   :  { %p712_p1 = scmp.lt.u32.totalorder %s708_s25, %s986_s1 }
   0x7   :  { %p714_p2 = pnand %p712_p1, %p709_p0 }
   0x9   :  { %717 = shalt.err (!%p714_p2)
}
   0xa   :  { %s718_s30 = scalar_lea.vmem %s34_s22, 64  ;;  %p723_p4 = scmp.lt.s32.totalorder %s34_s22, %s34_s22 }
   0xb   :  { %p719_p3 = scmp.ne.s32.totalorder %s34_s22, %s718_s30  ;;  %p724_p5 = scmp.lt.s32.totalorder %s718_s30, %s718_s30 }
   0xd   :  { %p725_p6 = por %p724_p5, %p723_p4 }
   0xf   :  { %p726_p7 = pnand %p725_p6, %p719_p3 }
  0x11   :  { %729 = shalt.err (!%p726_p7)
}
  0x12   :  { %36 = dma.hbm_to_vmem [thread:$0]  %s986_s1, 64, %s34_s22, [#allocation6]  }
  0x13   :  { %s849_s9 = smov [#allocation8]   ;;  %s850_s11 = smov [#allocation2]  }
  0x14   :  { %s54_s10 = sshll.u32 %s849_s9, 4  ;;  %s20_s12 = sshll.u32 %s850_s11, 4  ;;  %s55_s10 = int_to_ptr.vmem [resolvable:$true] %s54_s10  ;;  %s21_s12 = int_to_ptr.vmem [resolvable:$true] %s20_s12 }
  0x15   :  { %s730_s15 = scalar_lea.hbm %s988_s3, 2048 }
  0x16   :  { %p731_p8 = scmp.ne.s32.totalorder %s988_s3, %s730_s15  ;;  %p734_p9 = scmp.lt.u32.totalorder %s730_s15, %s988_s3 }
  0x18   :  { %p736_p10 = pnand %p734_p9, %p731_p8 }
  0x1a   :  { %739 = shalt.err (!%p736_p10)
}
  0x1b   :  { %s740_s1 = scalar_lea.vmem %s55_s10, 2048  ;;  %p745_p12 = scmp.lt.s32.totalorder %s55_s10, %s55_s10 }
  0x1c   :  { %p741_p11 = scmp.ne.s32.totalorder %s55_s10, %s740_s1  ;;  %p746_p13 = scmp.lt.s32.totalorder %s740_s1, %s740_s1 }
  0x1e   :  { %p747_p0 = por %p746_p13, %p745_p12 }
  0x20   :  { %p748_p1 = pnand %p747_p0, %p741_p11 }
  0x22   :  { %751 = shalt.err (!%p748_p1)
}
  0x23   :  { %s851_s20 = smov 64   ;;  %s852_s21 = smov 4  }
  0x24   :  { %60 = dma.hbm_to_vmem [thread:$0]  %s988_s3, 2048, %s55_s10, [#allocation9], %s851_s20, %s851_s20, %s852_s21  }
  0x25   :  { %s752_s26 = scalar_lea.hbm %s985_s0, 128 }
  0x26   :  { %p753_p2 = scmp.ne.s32.totalorder %s985_s0, %s752_s26  ;;  %p756_p3 = scmp.lt.u32.totalorder %s752_s26, %s985_s0 }
  0x28   :  { %p758_p4 = pnand %p756_p3, %p753_p2 }
  0x2a   :  { %761 = shalt.err (!%p758_p4)
}
  0x2b   :  { %s762_s7 = scalar_lea.vmem %s21_s12, 128  ;;  %p767_p6 = scmp.lt.s32.totalorder %s21_s12, %s21_s12 }
  0x2c   :  { %p763_p5 = scmp.ne.s32.totalorder %s21_s12, %s762_s7  ;;  %p768_p7 = scmp.lt.s32.totalorder %s762_s7, %s762_s7 }
  0x2e   :  { %p769_p8 = por %p768_p7, %p767_p6 }
  0x30   :  { %p770_p9 = pnand %p769_p8, %p763_p5 }
  0x32   :  { %773 = shalt.err (!%p770_p9)
}
  0x33   :  { %26 = dma.hbm_to_vmem [thread:$0]  %s985_s0, 128, %s21_s12, [#allocation3], %s851_s20, %s851_s20, %s852_s21  }
  0x34   :  { %s853_s9 = smov [#allocation7]   ;;  %s854_s11 = smov [#allocation10]  }
  0x35   :  { %s42_s10 = sshll.u32 %s853_s9, 4  ;;  %s66_s13 = sshll.u32 %s854_s11, 4  ;;  %s43_s10 = int_to_ptr.vmem [resolvable:$true] %s42_s10  ;;  %s67_s13 = int_to_ptr.vmem [resolvable:$true] %s66_s13 }
  0x36   :  { %s774_s16 = scalar_lea.hbm %s987_s2, 128 }
  0x37   :  { %p775_p10 = scmp.ne.s32.totalorder %s987_s2, %s774_s16  ;;  %p778_p11 = scmp.lt.u32.totalorder %s774_s16, %s987_s2 }
  0x39   :  { %p780_p12 = pnand %p778_p11, %p775_p10 }
  0x3b   :  { %783 = shalt.err (!%p780_p12)
}
  0x3c   :  { %s784_s0 = scalar_lea.vmem %s43_s10, 128  ;;  %p789_p0 = scmp.lt.s32.totalorder %s43_s10, %s43_s10 }
  0x3d   :  { %p785_p13 = scmp.ne.s32.totalorder %s43_s10, %s784_s0  ;;  %p790_p1 = scmp.lt.s32.totalorder %s784_s0, %s784_s0 }
  0x3f   :  { %p791_p2 = por %p790_p1, %p789_p0 }
  0x41   :  { %p792_p3 = pnand %p791_p2, %p785_p13 }
  0x43   :  { %795 = shalt.err (!%p792_p3)
}
  0x44   :  { %48 = dma.hbm_to_vmem [thread:$0]  %s987_s2, 128, %s43_s10, [#allocation6], %s851_s20, %s851_s20, %s852_s21  }
  0x45   :  { %s796_s25 = scalar_lea.hbm %s989_s4, 2048 }
  0x46   :  { %p797_p4 = scmp.ne.s32.totalorder %s989_s4, %s796_s25  ;;  %p800_p5 = scmp.lt.u32.totalorder %s796_s25, %s989_s4 }
  0x48   :  { %p802_p6 = pnand %p800_p5, %p797_p4 }
  0x4a   :  { %805 = shalt.err (!%p802_p6)
}
  0x4b   :  { %s806_s30 = scalar_lea.vmem %s67_s13, 2048  ;;  %p811_p8 = scmp.lt.s32.totalorder %s67_s13, %s67_s13 }
  0x4c   :  { %p807_p7 = scmp.ne.s32.totalorder %s67_s13, %s806_s30  ;;  %p812_p9 = scmp.lt.s32.totalorder %s806_s30, %s806_s30 }
  0x4e   :  { %p813_p10 = por %p812_p9, %p811_p8 }
  0x50   :  { %p814_p11 = pnand %p813_p10, %p807_p7 }
  0x52   :  { %817 = shalt.err (!%p814_p11)
}
  0x53   :  { %72 = dma.hbm_to_vmem [thread:$0]  %s989_s4, 2048, %s67_s13, [#allocation9], %s851_s20, %s851_s20, %s852_s21  }
  0x54   :  { %840 = dma.done.wait [#allocation3], 128  }
  0x55   :  { %841 = vsyncadd [#allocation3], 4294967168 }
  0x56   :  { %842 = dma.done.wait [#allocation6], 192  }
  0x57   :  { %843 = vsyncadd [#allocation6], 4294967104 }
  0x58   :  { %844 = dma.done.wait [#allocation9], 4096  }
  0x59   :  { %845 = vsyncadd [#allocation9], 4294963200  ;;  %v855_v0 = vmov 0.0   ;;  %vm856_vm0 = vmmov 0   ;;  %v674_v1 = vld [vmem:[#allocation7] sm:$0xff]   ;;  %v675_v2 = vld [vmem:[#allocation2] sm:$0xff]  }
  0x5a   :  { %652 = vmatprep.subr.bf16.mxu1 %v855_v0  ;;  %654 = vmatprep.mubr.msk.bf16.mxu1 %vm856_vm0, %v855_v0  ;;  %vm106_vm1 = vcmask 130048   ;;  %v676_v3 = vld [vmem:[#allocation8 + $0x40] sm:$0xff]   ;;  %v678_v5 = vld [vmem:[#allocation8 + $0x48] sm:$0xff]   ;;  %v680_v7 = vld [vmem:[#allocation8 + $0x50] sm:$0xff]   ;;  %s857_s8 = smov [#allocation11]  }
  0x5b   :  { %658 = vmatprep.subr.bf16.mxu0 %v855_v0  ;;  %660 = vmatprep.mubr.msk.bf16.mxu0 %vm856_vm0, %v855_v0  ;;  %v677_v4 = vld [vmem:[#allocation8] sm:$0xff]   ;;  %v679_v6 = vld [vmem:[#allocation8 + $0x8] sm:$0xff]   ;;  %v681_v8 = vld [vmem:[#allocation8 + $0x10] sm:$0xff]   ;;  %s555_s9 = sshll.u32 %s857_s8, 4  ;;  %s556_s9 = int_to_ptr.vmem [resolvable:$true] %s555_s9 }
  0x5c   :  { %653 = vmatpush3.bf16.msra.mxu1 %v674_v1  ;;  %v682_v9 = vld [vmem:[#allocation8 + $0x58] sm:$0xff]   ;;  %v684_v11 = vld [vmem:[#allocation8 + $0x60] sm:$0xff]   ;;  %v686_v13 = vld [vmem:[#allocation8 + $0x68] sm:$0xff]   ;;  %s818_s10 = scalar_lea.vmem %s556_s9, 128  ;;  %p823_p13 = scmp.lt.s32.totalorder %s556_s9, %s556_s9 }
  0x5d   :  { %606 = vmatprep.subr.bf16.mxu1 %v676_v3  ;;  %v683_v10 = vld [vmem:[#allocation8 + $0x18] sm:$0xff]   ;;  %v685_v12 = vld [vmem:[#allocation8 + $0x20] sm:$0xff]   ;;  %v687_v14 = vld [vmem:[#allocation8 + $0x28] sm:$0xff]   ;;  %p819_p12 = scmp.ne.s32.totalorder %s556_s9, %s818_s10  ;;  %p824_p0 = scmp.lt.s32.totalorder %s818_s10, %s818_s10 }
  0x5e   :  { %v688_v15 = vld [vmem:[#allocation8 + $0x70] sm:$0xff]   ;;  %v690_v17 = vld [vmem:[#allocation8 + $0x78] sm:$0xff]   ;;  %v569_v25 = vld [vmem:[%s990_s5] ss:$0 sm:$0xff] }
  0x5f   :  { %655 = vmatmul.mubr.msk.bf16.vlgmr.msra.gmra.mrb[0].mxu1 %vm106_vm1, %v675_v2  ;;  %v689_v16 = vld [vmem:[#allocation8 + $0x30] sm:$0xff]   ;;  %v691_v18 = vld [vmem:[#allocation8 + $0x38] sm:$0xff]   ;;  %v692_v35 = vld [vmem:[#allocation10 + $0x40] sm:$0xff]   ;;  %p825_p1 = por %p824_p0, %p823_p13 }
  0x60   :  { %607 = vmatpush3.bf16.msra.mxu1 %v677_v4  ;;  %v329_v37 = vld [vmem:[#allocation5] sm:$0xf]  ;;  %v693_v38 = vld [vmem:[#allocation10] sm:$0xff]   ;;  %v694_v39 = vld [vmem:[#allocation10 + $0x48] sm:$0xff]  }
  0x61   :  { %608 = vmatprep.subr.bf16.mxu1 %v678_v5  ;;  %v695_v40 = vld [vmem:[#allocation10 + $0x8] sm:$0xff]   ;;  %v696_v41 = vld [vmem:[#allocation10 + $0x50] sm:$0xff]   ;;  %v698_v43 = vld [vmem:[#allocation10 + $0x58] sm:$0xff]   ;;  %p826_p2 = pnand %p825_p1, %p819_p12 }
  0x62   :  { %v697_v42 = vld [vmem:[#allocation10 + $0x10] sm:$0xff]   ;;  %v699_v44 = vld [vmem:[#allocation10 + $0x18] sm:$0xff]   ;;  %v700_v45 = vld [vmem:[#allocation10 + $0x60] sm:$0xff]  }
  0x63   :  { %v701_v46 = vld [vmem:[#allocation10 + $0x20] sm:$0xff]   ;;  %v702_v47 = vld [vmem:[#allocation10 + $0x68] sm:$0xff]   ;;  %v704_v49 = vld [vmem:[#allocation10 + $0x70] sm:$0xff]  }
  0x64   :  { %609 = vmatpush3.bf16.msra.mxu1 %v679_v6  ;;  %v703_v48 = vld [vmem:[#allocation10 + $0x28] sm:$0xff]   ;;  %v705_v50 = vld [vmem:[#allocation10 + $0x30] sm:$0xff]   ;;  %v706_v51 = vld [vmem:[#allocation10 + $0x78] sm:$0xff]  }
  0x65   :  { %610 = vmatprep.subr.bf16.mxu1 %v680_v7  ;;  %v707_v52 = vld [vmem:[#allocation10 + $0x38] sm:$0xff]   ;;  %v587_v60 = vld [vmem:[%s990_s5 + $0x1] ss:$0 sm:$0xff] }
  0x68   :  { %611 = vmatpush3.bf16.msra.mxu1 %v681_v8 }
  0x69   :  { %612 = vmatprep.subr.bf16.mxu1 %v682_v9 }
  0x6c   :  { %613 = vmatpush3.bf16.msra.mxu1 %v683_v10 }
  0x6d   :  { %614 = vmatprep.subr.bf16.mxu1 %v684_v11 }
  0x70   :  { %615 = vmatpush3.bf16.msra.mxu1 %v685_v12 }
  0x71   :  { %616 = vmatprep.subr.bf16.mxu1 %v686_v13 }
  0x74   :  { %617 = vmatpush3.bf16.msra.mxu1 %v687_v14 }
  0x75   :  { %618 = vmatprep.subr.bf16.mxu1 %v688_v15 }
  0x78   :  { %619 = vmatpush3.bf16.msra.mxu1 %v689_v16 }
  0x79   :  { %620 = vmatprep.subr.bf16.mxu1 %v690_v17 }
  0x7c   :  { %621 = vmatpush3.bf16.msra.mxu1 %v691_v18 }
 0x132   :  { %v144_v19 = vpop.f32.mrb[0].mxu1 }
 0x133   :  { %v656_v20 = vpop.f32.mrb[1].mxu1 }
 0x134   :  { %v147_v21 = vpop.f32.mrb[2].mxu1 }
 0x135   :  { %v151_v22 = vpack.c.bf16 %v147_v21, %v144_v19  ;;  %v657_v23 = vpop.f32.mrb[3].mxu1 }
 0x137   :  { %317 = vmatprep.mubr.bf16.mxu1 %v151_v22 }
 0x138   :  { %318 = vmatmul.mubr.bf16.vlgmr.msra.gmra.mrb[4].mxu1 %v674_v1 }
 0x20b   :  { %v622_v24 = vpop.f32.mrb[4].mxu1 }
 0x20c   :  { %v623_v26 = vpop.f32.mrb[5].mxu1 }
 0x20d   :  { %v624_v27 = vadd.f32 %v623_v26, %v622_v24  ;;  %v625_v28 = vpop.f32.mrb[6].mxu1 }
 0x20e   :  { %v626_v29 = vpop.f32.mrb[7].mxu1 }
 0x20f   :  { %v320_v30 = vadd.f32 %v624_v27, %v569_v25  ;;  %v627_v31 = vadd.f32 %v626_v29, %v625_v28 }
 0x211   :  { %v323_v32 = vadd.f32 %v627_v31, %v569_v25  ;;  %v326_v33 = vmax.f32 %v320_v30, 0.0 }
 0x213   :  { %v327_v34 = vmax.f32 %v323_v32, 0.0  ;;  %v373_v56 = vpack.c.bf16 %v326_v33, %v326_v33 }
 0x215   :  { %v328_v36 = vpack.c.bf16 %v327_v34, %v326_v33 }
 0x217   :  { %659 = vmatpush3.bf16.msra.mxu0 %v328_v36 }
 0x218   :  { %630 = vmatprep.subr.bf16.mxu0 %v692_v35 }
 0x21a   :  { %661 = vmatmul.mubr.msk.bf16.vlgmr.msra.gmra.mrb[0].mxu0 %vm106_vm1, %v329_v37 }
 0x21b   :  { %631 = vmatpush3.bf16.msra.mxu0 %v693_v38 }
 0x21c   :  { %632 = vmatprep.subr.bf16.mxu0 %v694_v39 }
 0x21f   :  { %633 = vmatpush3.bf16.msra.mxu0 %v695_v40 }
 0x220   :  { %634 = vmatprep.subr.bf16.mxu0 %v696_v41 }
 0x223   :  { %635 = vmatpush3.bf16.msra.mxu0 %v697_v42 }
 0x224   :  { %636 = vmatprep.subr.bf16.mxu0 %v698_v43 }
 0x227   :  { %637 = vmatpush3.bf16.msra.mxu0 %v699_v44 }
 0x228   :  { %638 = vmatprep.subr.bf16.mxu0 %v700_v45 }
 0x22b   :  { %639 = vmatpush3.bf16.msra.mxu0 %v701_v46 }
 0x22c   :  { %640 = vmatprep.subr.bf16.mxu0 %v702_v47 }
 0x22f   :  { %641 = vmatpush3.bf16.msra.mxu0 %v703_v48 }
 0x230   :  { %642 = vmatprep.subr.bf16.mxu0 %v704_v49 }
 0x233   :  { %643 = vmatpush3.bf16.msra.mxu0 %v705_v50 }
 0x234   :  { %644 = vmatprep.subr.bf16.mxu0 %v706_v51 }
 0x237   :  { %645 = vmatpush3.bf16.msra.mxu0 %v707_v52 }
 0x2ed   :  { %v367_v53 = vpop.f32.mrb[0].mxu0 }
 0x2ee   :  { %v374_v54 = vpack.c.bf16 %v367_v53, %v367_v53  ;;  %v662_v55 = vpop.f32.mrb[1].mxu0 }
 0x2ef   :  { %v370_v57 = vpop.f32.mrb[2].mxu0 }
 0x2f0   :  { %v663_v58 = vpop.f32.mrb[3].mxu0  ;;  %540 = vmatprep.mubr.bf16.mxu0 %v374_v54 }
 0x2f1   :  { %541 = vmatmul.mubr.bf16.vlgmr.msra.gmra.mrb[4].mxu0 %v373_v56 }
 0x3c4   :  { %v646_v59 = vpop.f32.mrb[4].mxu0 }
 0x3c5   :  { %v647_v61 = vpop.f32.mrb[5].mxu0 }
 0x3c6   :  { %v648_v62 = vadd.f32 %v647_v61, %v646_v59  ;;  %v649_v63 = vpop.f32.mrb[6].mxu0 }
 0x3c7   :  { %v650_v0 = vpop.f32.mrb[7].mxu0 }
 0x3c8   :  { %v543_v1 = vadd.f32 %v648_v62, %v587_v60 }
 0x3ca   :  { %548 = vst [vmem:[#allocation11] sm:$0xff] %v543_v1 }
 0x3cb   :  { %829 = shalt.err (!%p826_p2)
}
 0x3cc   :  { %s830_s5 = scalar_lea.hbm %s991_s6, 128 }
 0x3cd   :  { %p831_p3 = scmp.ne.s32.totalorder %s991_s6, %s830_s5  ;;  %p834_p4 = scmp.lt.u32.totalorder %s830_s5, %s991_s6 }
 0x3cf   :  { %p836_p5 = pnand %p834_p4, %p831_p3 }
 0x3d1   :  { %839 = shalt.err (!%p836_p5)
}
 0x3d2   :  { %558 = dma.vmem_to_hbm [thread:$0]  %s556_s9, 128, %s991_s6, [#allocation4]  }
 0x3d3   :  { %846 = dma.done.wait [#allocation4], 128  }
 0x3d4   :  { %847 = vsyncadd [#allocation4], 4294967168 }
 0x3d5   :  { %562 = vsyncpa [#allocation3], 1 }
 0x3d6   :  { %563 = vsyncpa [#allocation6], 1 }
 0x3d7   :  { %564 = vsyncpa [#allocation9], 1 }
 0x3d8   :  { %565 = vsyncpa [#allocation4], 1 }

</bundles_post_ra>
